<compile_context>
chip_gen: v6e
topology: v6e:2x2x1
jax: 0.10.0
libtpu: 0.0.40
codegen_flags: <defaults>
</compile_context>

<pallas_src>
import functools
import math

import jax
import jax.numpy as jnp
import numpy as np
from jax.experimental import pallas as pl
from jax.experimental.pallas import tpu as pltpu


# ------------------------------- tiling utils -------------------------------

def _tile(dim, target, unit):
    """Largest multiple of `unit` that divides `dim` and is <= target; else dim.

    Returning `dim` is always legal because a block equal to the full array
    dimension bypasses the (8, 128) divisibility constraint.
    """
    if dim <= target:
        return dim
    t = (target // unit) * unit
    while t >= unit:
        if dim % t == 0:
            return t
        t -= unit
    return dim


# ----------------------------- Pallas kernels ------------------------------

def _norm_matmul_kernel(x_ref, g_ref, w_ref, o_ref, *, eps):
    # Fused RMSNorm prologue + matmul: o = rmsnorm(x) @ W   (bf16 MXU, f32 acc)
    x = x_ref[...]                                        # (tm, D) f32
    ms = jnp.mean(x * x, axis=-1, keepdims=True)
    xn = (x * jax.lax.rsqrt(ms + eps)) * g_ref[...]       # f32 elementwise
    o_ref[...] = jnp.dot(xn.astype(jnp.bfloat16), w_ref[...],
                         preferred_element_type=jnp.float32)


def norm_matmul(x2d, gamma, w_bf16, *, eps, tm_target=256, tn_target=512):
    M, K = x2d.shape
    N = w_bf16.shape[1]
    tm = _tile(M, tm_target, 8)
    tn = _tile(N, tn_target, 128)
    return pl.pallas_call(
        functools.partial(_norm_matmul_kernel, eps=eps),
        out_shape=jax.ShapeDtypeStruct((M, N), jnp.float32),
        grid=(M // tm, N // tn),
        in_specs=[
            pl.BlockSpec((tm, K), lambda i, j: (i, 0)),
            pl.BlockSpec((1, K), lambda i, j: (0, 0)),
            pl.BlockSpec((K, tn), lambda i, j: (0, j)),
        ],
        out_specs=pl.BlockSpec((tm, tn), lambda i, j: (i, j)),
        compiler_params=pltpu.CompilerParams(
            dimension_semantics=("parallel", "parallel")),
    )(x2d, gamma.reshape(1, K), w_bf16)


def _matmul_kernel(x_ref, w_ref, o_ref, acc_ref):
    # K-accumulated tiled matmul with f32 VMEM accumulator.
    @pl.when(pl.program_id(2) == 0)
    def _():
        acc_ref[...] = jnp.zeros_like(acc_ref)

    acc_ref[...] += jnp.dot(x_ref[...].astype(jnp.bfloat16), w_ref[...],
                            preferred_element_type=jnp.float32)

    @pl.when(pl.program_id(2) == pl.num_programs(2) - 1)
    def _():
        o_ref[...] = acc_ref[...]


def matmul(x2d, w_bf16, *, tm_target=256, tn_target=512, tk_target=512):
    M, K = x2d.shape
    N = w_bf16.shape[1]
    tm = _tile(M, tm_target, 8)
    tn = _tile(N, tn_target, 128)
    tk = _tile(K, tk_target, 128)
    return pl.pallas_call(
        _matmul_kernel,
        out_shape=jax.ShapeDtypeStruct((M, N), jnp.float32),
        grid=(M // tm, N // tn, K // tk),
        in_specs=[
            pl.BlockSpec((tm, tk), lambda i, j, k: (i, k)),
            pl.BlockSpec((tk, tn), lambda i, j, k: (k, j)),
        ],
        out_specs=pl.BlockSpec((tm, tn), lambda i, j, k: (i, j)),
        scratch_shapes=[pltpu.VMEM((tm, tn), jnp.float32)],
        compiler_params=pltpu.CompilerParams(
            dimension_semantics=("parallel", "parallel", "arbitrary")),
    )(x2d, w_bf16)


def _ffn_kernel(x_ref, g_ref, wg_ref, wu_ref, wd_ref, o_ref, xn_sc, acc_sc, *, eps):
    # Fused RMSNorm + SwiGLU FFN, tiled over the hidden dim (grid axis 1):
    #   acc += (silu(xn @ Wg[:, j]) * (xn @ Wu[:, j])) @ Wd[j, :]
    j = pl.program_id(1)

    @pl.when(j == 0)
    def _():
        x = x_ref[...]                                    # (tm, D) f32
        ms = jnp.mean(x * x, axis=-1, keepdims=True)
        xn_sc[...] = ((x * jax.lax.rsqrt(ms + eps)) * g_ref[...]).astype(jnp.bfloat16)
        acc_sc[...] = jnp.zeros_like(acc_sc)

    xn = xn_sc[...]                                       # (tm, D) bf16
    gate = jnp.dot(xn, wg_ref[...], preferred_element_type=jnp.float32)
    up = jnp.dot(xn, wu_ref[...], preferred_element_type=jnp.float32)
    hdn = (gate * jax.nn.sigmoid(gate)) * up              # f32 elementwise (v5e-safe)
    acc_sc[...] += jnp.dot(hdn.astype(jnp.bfloat16), wd_ref[...],
                           preferred_element_type=jnp.float32)

    @pl.when(j == pl.num_programs(1) - 1)
    def _():
        o_ref[...] = acc_sc[...]


def ffn(x2d, gamma, wg_bf16, wu_bf16, wd_bf16, *, eps, tm_target=128, th_target=256):
    M, D = x2d.shape
    Hh = wg_bf16.shape[1]
    tm = _tile(M, tm_target, 8)
    th = _tile(Hh, th_target, 128)
    return pl.pallas_call(
        functools.partial(_ffn_kernel, eps=eps),
        out_shape=jax.ShapeDtypeStruct((M, D), jnp.float32),
        grid=(M // tm, Hh // th),
        in_specs=[
            pl.BlockSpec((tm, D), lambda i, j: (i, 0)),
            pl.BlockSpec((1, D), lambda i, j: (0, 0)),
            pl.BlockSpec((D, th), lambda i, j: (0, j)),
            pl.BlockSpec((D, th), lambda i, j: (0, j)),
            pl.BlockSpec((th, D), lambda i, j: (j, 0)),
        ],
        out_specs=pl.BlockSpec((tm, D), lambda i, j: (i, 0)),
        scratch_shapes=[pltpu.VMEM((tm, D), jnp.bfloat16),
                        pltpu.VMEM((tm, D), jnp.float32)],
        compiler_params=pltpu.CompilerParams(
            dimension_semantics=("parallel", "arbitrary")),
    )(x2d, gamma.reshape(1, D), wg_bf16, wu_bf16, wd_bf16)


def _rmsnorm_kernel(x_ref, g_ref, o_ref, *, eps):
    x = x_ref[...]
    ms = jnp.mean(x * x, axis=-1, keepdims=True)
    o_ref[...] = (x * jax.lax.rsqrt(ms + eps)) * g_ref[...]


def rmsnorm(x2d, gamma, eps, *, tm_target=256):
    M, D = x2d.shape
    tm = _tile(M, tm_target, 8)
    return pl.pallas_call(
        functools.partial(_rmsnorm_kernel, eps=eps),
        out_shape=jax.ShapeDtypeStruct((M, D), jnp.float32),
        grid=(M // tm,),
        in_specs=[pl.BlockSpec((tm, D), lambda i: (i, 0)),
                  pl.BlockSpec((1, D), lambda i: (0, 0))],
        out_specs=pl.BlockSpec((tm, D), lambda i: (i, 0)),
        compiler_params=pltpu.CompilerParams(dimension_semantics=("parallel",)),
    )(x2d, gamma.reshape(1, D))


def _attn_kernel(q_ref, k_ref, v_ref, o_ref, m_sc, l_sc, acc_sc, *,
                 scale, s_q, n_rep):
    # GQA flash attention. Grid = (B, n_kv, kv_tiles).  q block is (R, hd) with
    # R = n_rep * s_q (all query heads of this kv group folded into rows).
    kt = pl.program_id(2)

    @pl.when(kt == 0)
    def _():
        m_sc[...] = jnp.full_like(m_sc, -1e30)
        l_sc[...] = jnp.zeros_like(l_sc)
        acc_sc[...] = jnp.zeros_like(acc_sc)

    q = q_ref[0, 0]                                       # (R, hd)   bf16
    k = k_ref[0, 0]                                       # (tkv, hd) bf16
    v = v_ref[0, 0]                                       # (tkv, hd) bf16
    tkv = k.shape[0]
    r_rows = n_rep * s_q

    # scores in f32 (softmax statistics / mask stay f32 even with bf16 MXU).
    s = jax.lax.dot_general(q, k, (((1,), (1,)), ((), ())),
                            preferred_element_type=jnp.float32) * scale

    # Causal mask built in-kernel (prefill: q position == seq index == key pos).
    row = jax.lax.broadcasted_iota(jnp.int32, (r_rows, tkv), 0)
    col = jax.lax.broadcasted_iota(jnp.int32, (r_rows, tkv), 1) + kt * tkv
    q_seq = row                                           # row % s_q, mod-free
    for rrep in range(1, n_rep):
        q_seq = q_seq - jnp.where(row >= rrep * s_q, s_q, 0)
    s = jnp.where(col <= q_seq, s, -1e30)

    m_prev = m_sc[...]
    m_new = jnp.maximum(m_prev, jnp.max(s, axis=-1, keepdims=True))
    alpha = jnp.exp(m_prev - m_new)
    p = jnp.exp(s - m_new)
    l_sc[...] = alpha * l_sc[...] + jnp.sum(p, axis=-1, keepdims=True)
    acc_sc[...] = alpha * acc_sc[...] + jnp.dot(p.astype(jnp.bfloat16), v,
                                                preferred_element_type=jnp.float32)
    m_sc[...] = m_new

    @pl.when(kt == pl.num_programs(2) - 1)
    def _():
        o_ref[0, 0] = acc_sc[...] * pl.reciprocal(l_sc[...], approx=True)


def attention(q_bf16, k_bf16, v_bf16):
    # q: (B, n_kv, n_rep*S, hd) bf16; k, v: (B, n_kv, S, hd) bf16
    B, n_kv, R, hd = q_bf16.shape
    S = k_bf16.shape[2]
    n_rep = R // S
    tkv = _tile(S, 512, 8)
    scale = 1.0 / math.sqrt(hd)
    return pl.pallas_call(
        functools.partial(_attn_kernel, scale=scale, s_q=S, n_rep=n_rep),
        out_shape=jax.ShapeDtypeStruct((B, n_kv, R, hd), jnp.float32),
        grid=(B, n_kv, S // tkv),
        in_specs=[
            pl.BlockSpec((1, 1, R, hd), lambda b, g, t: (b, g, 0, 0)),
            pl.BlockSpec((1, 1, tkv, hd), lambda b, g, t: (b, g, t, 0)),
            pl.BlockSpec((1, 1, tkv, hd), lambda b, g, t: (b, g, t, 0)),
        ],
        out_specs=pl.BlockSpec((1, 1, R, hd), lambda b, g, t: (b, g, 0, 0)),
        scratch_shapes=[pltpu.VMEM((R, 1), jnp.float32),
                        pltpu.VMEM((R, 1), jnp.float32),
                        pltpu.VMEM((R, hd), jnp.float32)],
        compiler_params=pltpu.CompilerParams(
            dimension_semantics=("parallel", "parallel", "arbitrary")),
    )(q_bf16, k_bf16, v_bf16)


# ------------------------------ JAX glue ------------------------------------

def precompute_rope(head_dim, max_pos, theta):
    inv = 1.0 / (theta ** (jnp.arange(0, head_dim, 2, dtype=jnp.float32) / head_dim))
    m = jnp.arange(max_pos, dtype=jnp.float32)
    freqs = jnp.outer(m, inv)                             # (max_pos, head_dim/2)
    return jnp.cos(freqs), jnp.sin(freqs)


def apply_rope(x, cos, sin):
    # x: (B, S, H, hd); cos/sin: (S, hd/2); interleaved-pair (complex) rotation
    B, S, H, hd = x.shape
    xr = x.reshape(B, S, H, hd // 2, 2)
    x0, x1 = xr[..., 0], xr[..., 1]
    c = cos[None, :, None, :]
    s = sin[None, :, None, :]
    o0 = x0 * c - x1 * s
    o1 = x0 * s + x1 * c
    return jnp.stack([o0, o1], axis=-1).reshape(B, S, H, hd)


def transformer_block(x, lp, cos, sin, cfg):
    B, S, D = x.shape
    H, n_kv, hd = cfg["n_heads"], cfg["n_kv_heads"], cfg["head_dim"]
    n_rep = H // n_kv

    x2 = x.reshape(B * S, D)

    # fused RMSNorm + QKV projection (single tiled matmul, bf16 MXU)
    qkv = norm_matmul(x2, lp["ln1_w"], lp["wqkv_t"], eps=cfg["eps"])
    nq, nk = H * hd, n_kv * hd
    xq = qkv[:, :nq].reshape(B, S, H, hd)
    xk = qkv[:, nq:nq + nk].reshape(B, S, n_kv, hd)
    xv = qkv[:, nq + nk:].reshape(B, S, n_kv, hd)

    xq = apply_rope(xq, cos, sin)
    xk = apply_rope(xk, cos, sin)

    # KV-cache dtype round trip (torch cache is bf16); prefill attends only
    # over the S fresh keys (later cache slots would be causally masked).
    k = jnp.transpose(xk.astype(jnp.bfloat16), (0, 2, 1, 3))   # (B, n_kv, S, hd)
    v = jnp.transpose(xv.astype(jnp.bfloat16), (0, 2, 1, 3))
    # fold the n_rep query heads of each kv group into the row dim
    q = jnp.transpose(xq, (0, 2, 1, 3)).reshape(B, n_kv, n_rep, S, hd)
    q = q.reshape(B, n_kv, n_rep * S, hd).astype(jnp.bfloat16)

    attn = attention(q, k, v)                              # (B, n_kv, n_rep*S, hd) f32
    attn = attn.reshape(B, n_kv, n_rep, S, hd)
    attn = jnp.transpose(attn, (0, 3, 1, 2, 4)).reshape(B * S, H * hd)

    h = x + matmul(attn, lp["wo_t"]).reshape(B, S, D)

    mlp = ffn(h.reshape(B * S, D), lp["ln2_w"], lp["wg_t"], lp["wu_t"],
              lp["wd_t"], eps=cfg["eps"]).reshape(B, S, D)
    return h + mlp


def transformer_forward(params, tokens, input_pos, cfg):
    B, S = tokens.shape
    D = cfg["dim"]
    h = params["embed"][tokens]                            # (B, S, D)
    cos = params["rope_cos"][input_pos]                    # (S, hd/2)
    sin = params["rope_sin"][input_pos]
    for lp in params["layers"]:
        h = transformer_block(h, lp, cos, sin, cfg)
    return rmsnorm(h.reshape(B * S, D), params["norm_w"], cfg["eps"]).reshape(B, S, D)


# ----------------------- pure-JAX reference (for check) ---------------------
# Mirrors the kernel's precision choices (bf16 weights / bf16 MXU inputs with
# f32 accumulation, f32 elementwise) so the comparison is apples-to-apples.

def reference_forward(params, tokens, input_pos, cfg):
    B, S = tokens.shape
    D = cfg["dim"]
    H, n_kv, hd = cfg["n_heads"], cfg["n_kv_heads"], cfg["head_dim"]
    eps = cfg["eps"]
    n_rep = H // n_kv

    def rms(x, w):
        ms = jnp.mean(x * x, axis=-1, keepdims=True)
        return (x * jax.lax.rsqrt(ms + eps)) * w

    def mm(a_f32, w_bf16):
        return jnp.dot(a_f32.astype(jnp.bfloat16), w_bf16,
                       preferred_element_type=jnp.float32)

    h = params["embed"][tokens]
    cos = params["rope_cos"][input_pos]
    sin = params["rope_sin"][input_pos]
    iq = jnp.arange(S)
    mask = iq[None, :] <= iq[:, None]                      # causal (prefill)

    for lp in params["layers"]:
        xn = rms(h, lp["ln1_w"])
        qkv = mm(xn.reshape(B * S, D), lp["wqkv_t"])
        nq, nk = H * hd, n_kv * hd
        xq = apply_rope(qkv[:, :nq].reshape(B, S, H, hd), cos, sin)
        xk = apply_rope(qkv[:, nq:nq + nk].reshape(B, S, n_kv, hd), cos, sin)
        xv = qkv[:, nq + nk:].reshape(B, S, n_kv, hd)
        keys = jnp.repeat(xk.astype(jnp.bfloat16), n_rep, axis=2)   # (B, S, H, hd)
        vals = jnp.repeat(xv.astype(jnp.bfloat16), n_rep, axis=2)
        qh = jnp.transpose(xq, (0, 2, 1, 3)).astype(jnp.bfloat16)
        kh = jnp.transpose(keys, (0, 2, 1, 3))
        vh = jnp.transpose(vals, (0, 2, 1, 3))
        s = jnp.einsum("bhsd,bhtd->bhst", qh, kh,
                       preferred_element_type=jnp.float32) / math.sqrt(hd)
        s = jnp.where(mask[None, None], s, -1e30)
        p = jax.nn.softmax(s, axis=-1)
        o = jnp.einsum("bhst,bhtd->bhsd", p.astype(jnp.bfloat16), vh,
                       preferred_element_type=jnp.float32)
        o2 = jnp.transpose(o, (0, 2, 1, 3)).reshape(B * S, H * hd)
        h = h + mm(o2, lp["wo_t"]).reshape(B, S, D)
        hn = rms(h, lp["ln2_w"]).reshape(B * S, D)
        g = mm(hn, lp["wg_t"])
        u = mm(hn, lp["wu_t"])
        h = h + mm((g * jax.nn.sigmoid(g)) * u, lp["wd_t"]).reshape(B, S, D)

    return rms(h, params["norm_w"])


# --------------------------------- main --------------------------------------

def init_params(key, cfg):
    D, H, n_kv, hd = cfg["dim"], cfg["n_heads"], cfg["n_kv_heads"], cfg["head_dim"]
    hidden, vocab, L = cfg["hidden_dim"], cfg["vocab_size"], cfg["n_layers"]

    def dense_t(k, out_dim, in_dim):
        # torch Linear weight is (out, in); store pre-transposed (in, out), bf16
        w = 0.02 * jax.random.normal(k, (out_dim, in_dim), jnp.float32)
        return jnp.transpose(w).astype(jnp.bfloat16)

    keys = jax.random.split(key, 1 + 7 * L)
    cos, sin = precompute_rope(hd, cfg["max_context"] * 2, cfg["rope_theta"])
    params = {
        "embed": 0.02 * jax.random.normal(keys[0], (vocab, D), jnp.float32),
        "norm_w": jnp.ones((D,), jnp.float32),
        "rope_cos": cos, "rope_sin": sin,
        "layers": [],
    }
    for i in range(L):
        k = keys[1 + 7 * i: 1 + 7 * (i + 1)]
        wq_t = dense_t(k[0], H * hd, D)
        wk_t = dense_t(k[1], n_kv * hd, D)
        wv_t = dense_t(k[2], n_kv * hd, D)
        params["layers"].append({
            "wqkv_t": jnp.concatenate([wq_t, wk_t, wv_t], axis=1),  # fused QKV
            "wo_t": dense_t(k[3], D, H * hd),
            "wg_t": dense_t(k[4], hidden, D),
            "wu_t": dense_t(k[5], hidden, D),
            "wd_t": dense_t(k[6], D, hidden),
            "ln1_w": jnp.ones((D,), jnp.float32),
            "ln2_w": jnp.ones((D,), jnp.float32),
        })
    return params


if __name__ == "__main__":
    cfg = dict(
        dim=64, n_layers=2, n_heads=4, n_kv_heads=2, head_dim=16,
        hidden_dim=128, vocab_size=128, eps=1e-5, rope_theta=10000.0,
        max_context=16,
    )
    B, S = 2, 8

    key = jax.random.PRNGKey(0)
    pkey, tkey = jax.random.split(key)
    params = init_params(pkey, cfg)
    tokens = jax.random.randint(tkey, (B, S), 0, cfg["vocab_size"], jnp.int32)
    input_pos = jnp.arange(S, dtype=jnp.int32)

    fwd = jax.jit(lambda p, t, ip: transformer_forward(p, t, ip, cfg))
    ref_fwd = jax.jit(lambda p, t, ip: reference_forward(p, t, ip, cfg))

    out = jax.block_until_ready(fwd(params, tokens, input_pos))
    ref = jax.block_until_ready(ref_fwd(params, tokens, input_pos))

    np.testing.assert_allclose(np.asarray(out), np.asarray(ref),
                               rtol=1e-2, atol=1e-2)
    assert out.shape == (B, S, cfg["dim"])
    assert np.all(np.isfinite(np.asarray(out)))
    print("KERNEL_OK")
</pallas_src>

<mosaic_0001>
module attributes {stable_mosaic.version = 11 : i64} {
  func.func @_norm_matmul_kernel(%arg0: i32, %arg1: i32, %arg2: memref<16x64xf32, #tpu.memory_space<vmem>>, %arg3: memref<1x64xf32, #tpu.memory_space<vmem>>, %arg4: memref<64x128xbf16, #tpu.memory_space<vmem>>, %arg5: memref<16x128xf32, #tpu.memory_space<vmem>>) attributes {dimension_semantics = [#tpu.dimension_semantics<parallel>, #tpu.dimension_semantics<parallel>], iteration_bounds = array<i64: 1, 1>, scalar_prefetch = 0 : i64, scratch_operands = 0 : i64, tpu.core_type = #tpu.core_type<tc>, window_params = [{transform_indices = @transform_0, window_bounds = array<i64: 16, 64>}, {pipeline_mode = #tpu.pipeline_mode<synchronous>, transform_indices = @transform_1, window_bounds = array<i64: 1, 64>}, {transform_indices = @transform_2, window_bounds = array<i64: 64, 128>}, {transform_indices = @transform_3, window_bounds = array<i64: 16, 128>}]} {
    %c0 = arith.constant 0 : index
    %c0_0 = arith.constant 0 : index
    %0 = vector.load %arg2[%c0, %c0_0] : memref<16x64xf32, #tpu.memory_space<vmem>>, vector<16x64xf32>
    %1 = arith.mulf %0, %0 : vector<16x64xf32>
    %cst = arith.constant dense<0.000000e+00> : vector<16xf32>
    %2 = vector.multi_reduction <add>, %1, %cst [1] : vector<16x64xf32> to vector<16xf32>
    %3 = vector.shape_cast %2 : vector<16xf32> to vector<16x1xf32>
    %cst_1 = arith.constant 6.400000e+01 : f32
    %4 = vector.broadcast %cst_1 : f32 to vector<16x1xf32>
    %5 = arith.divf %3, %4 : vector<16x1xf32>
    %cst_2 = arith.constant 9.99999974E-6 : f32
    %6 = vector.broadcast %cst_2 : f32 to vector<16x1xf32>
    %7 = arith.addf %5, %6 : vector<16x1xf32>
    %8 = math.rsqrt %7 : vector<16x1xf32>
    %9 = vector.broadcast %8 : vector<16x1xf32> to vector<16x64xf32>
    %10 = arith.mulf %0, %9 : vector<16x64xf32>
    %c0_3 = arith.constant 0 : index
    %c0_4 = arith.constant 0 : index
    %11 = vector.load %arg3[%c0_3, %c0_4] : memref<1x64xf32, #tpu.memory_space<vmem>>, vector<1x64xf32>
    %12 = vector.broadcast %11 : vector<1x64xf32> to vector<16x64xf32>
    %13 = arith.mulf %10, %12 : vector<16x64xf32>
    %14 = arith.truncf %13 : vector<16x64xf32> to vector<16x64xbf16>
    %c0_5 = arith.constant 0 : index
    %c0_6 = arith.constant 0 : index
    %15 = vector.load %arg4[%c0_5, %c0_6] : memref<64x128xbf16, #tpu.memory_space<vmem>>, vector<64x128xbf16>
    %cst_7 = arith.constant dense<0.000000e+00> : vector<16x128xf32>
    %16 = tpu.matmul %14, %15, %cst_7 {dimension_numbers = #tpu.dot_dimension_numbers<[1], [0], [0], [1], [0, 0, 1, 1], [], []>} : vector<16x64xbf16>, vector<64x128xbf16>, vector<16x128xf32> -> vector<16x128xf32>
    %c0_8 = arith.constant 0 : index
    %c0_9 = arith.constant 0 : index
    %17 = vector.load %arg5[%c0_8, %c0_9] : memref<16x128xf32, #tpu.memory_space<vmem>>, vector<16x128xf32>
    tpu.vector_store %arg5[%c0_8, %c0_9], %16 {strides = array<i32>} : memref<16x128xf32, #tpu.memory_space<vmem>>, vector<16x128xf32>,
    return
  }
  func.func @transform_0(%arg0: i32, %arg1: i32) -> (i32, i32) {
    %c0_i32 = arith.constant 0 : i32
    %c0_i32_0 = arith.constant 0 : i32
    return %arg0, %c0_i32 : i32, i32
  }
  func.func @transform_1(%arg0: i32, %arg1: i32) -> (i32, i32) {
    %c0_i32 = arith.constant 0 : i32
    %c0_i32_0 = arith.constant 0 : i32
    %c0_i32_1 = arith.constant 0 : i32
    return %c0_i32, %c0_i32_0 : i32, i32
  }
  func.func @transform_2(%arg0: i32, %arg1: i32) -> (i32, i32) {
    %c0_i32 = arith.constant 0 : i32
    %c0_i32_0 = arith.constant 0 : i32
    return %c0_i32, %arg1 : i32, i32
  }
  func.func @transform_3(%arg0: i32, %arg1: i32) -> (i32, i32) {
    %c0_i32 = arith.constant 0 : i32
    return %arg0, %arg1 : i32, i32
  }
}

module attributes {stable_mosaic.version = 11 : i64} {
  func.func @_attn_kernel(%arg0: i32, %arg1: i32, %arg2: i32, %arg3: memref<1x1x16x16xbf16, #tpu.memory_space<vmem>>, %arg4: memref<1x1x8x16xbf16, #tpu.memory_space<vmem>>, %arg5: memref<1x1x8x16xbf16, #tpu.memory_space<vmem>>, %arg6: memref<1x1x16x16xf32, #tpu.memory_space<vmem>>, %arg7: memref<16x1xf32, #tpu.memory_space<vmem>>, %arg8: memref<16x1xf32, #tpu.memory_space<vmem>>, %arg9: memref<16x16xf32, #tpu.memory_space<vmem>>) attributes {dimension_semantics = [#tpu.dimension_semantics<parallel>, #tpu.dimension_semantics<parallel>, #tpu.dimension_semantics<arbitrary>], iteration_bounds = array<i64: 2, 2, 1>, scalar_prefetch = 0 : i64, scratch_operands = 3 : i64, tpu.core_type = #tpu.core_type<tc>, window_params = [{transform_indices = @transform_0, window_bounds = array<i64: 1, 1, 16, 16>}, {transform_indices = @transform_1, window_bounds = array<i64: 1, 1, 8, 16>}, {transform_indices = @transform_2, window_bounds = array<i64: 1, 1, 8, 16>}, {transform_indices = @transform_3, window_bounds = array<i64: 1, 1, 16, 16>}]} {
    %c0_i32 = arith.constant 0 : i32
    %0 = arith.cmpi eq, %arg2, %c0_i32 : i32
    %1 = arith.extui %0 : i1 to i32
    %c0_i32_0 = arith.constant 0 : i32
    %2 = arith.cmpi ne, %1, %c0_i32_0 : i32
    scf.if %2 {
      %cst_34 = arith.constant -1.000000e+30 : f32
      %52 = vector.broadcast %cst_34 : f32 to vector<16x1xf32>
      %c0_35 = arith.constant 0 : index
      %c0_36 = arith.constant 0 : index
      %53 = vector.load %arg7[%c0_35, %c0_36] : memref<16x1xf32, #tpu.memory_space<vmem>>, vector<16x1xf32>
      tpu.vector_store %arg7[%c0_35, %c0_36], %52 {strides = array<i32>} : memref<16x1xf32, #tpu.memory_space<vmem>>, vector<16x1xf32>,
      %cst_37 = arith.constant 0.000000e+00 : f32
      %54 = vector.broadcast %cst_37 : f32 to vector<16x1xf32>
      %c0_38 = arith.constant 0 : index
      %c0_39 = arith.constant 0 : index
      %55 = vector.load %arg8[%c0_38, %c0_39] : memref<16x1xf32, #tpu.memory_space<vmem>>, vector<16x1xf32>
      tpu.vector_store %arg8[%c0_38, %c0_39], %54 {strides = array<i32>} : memref<16x1xf32, #tpu.memory_space<vmem>>, vector<16x1xf32>,
      %cst_40 = arith.constant 0.000000e+00 : f32
      %56 = vector.broadcast %cst_40 : f32 to vector<16x16xf32>
      %c0_41 = arith.constant 0 : index
      %c0_42 = arith.constant 0 : index
      %57 = vector.load %arg9[%c0_41, %c0_42] : memref<16x16xf32, #tpu.memory_space<vmem>>, vector<16x16xf32>
      tpu.vector_store %arg9[%c0_41, %c0_42], %56 {strides = array<i32>} : memref<16x16xf32, #tpu.memory_space<vmem>>, vector<16x16xf32>,
    } else {
    }
    %c0 = arith.constant 0 : index
    %c0_1 = arith.constant 0 : index
    %c0_2 = arith.constant 0 : index
    %c0_3 = arith.constant 0 : index
    %3 = vector.load %arg3[%c0, %c0_1, %c0_2, %c0_3] : memref<1x1x16x16xbf16, #tpu.memory_space<vmem>>, vector<1x1x16x16xbf16>
    %4 = vector.shape_cast %3 : vector<1x1x16x16xbf16> to vector<16x16xbf16>
    %c0_4 = arith.constant 0 : index
    %c0_5 = arith.constant 0 : index
    %c0_6 = arith.constant 0 : index
    %c0_7 = arith.constant 0 : index
    %5 = vector.load %arg4[%c0_4, %c0_5, %c0_6, %c0_7] : memref<1x1x8x16xbf16, #tpu.memory_space<vmem>>, vector<1x1x8x16xbf16>
    %6 = vector.shape_cast %5 : vector<1x1x8x16xbf16> to vector<8x16xbf16>
    %c0_8 = arith.constant 0 : index
    %c0_9 = arith.constant 0 : index
    %c0_10 = arith.constant 0 : index
    %c0_11 = arith.constant 0 : index
    %7 = vector.load %arg5[%c0_8, %c0_9, %c0_10, %c0_11] : memref<1x1x8x16xbf16, #tpu.memory_space<vmem>>, vector<1x1x8x16xbf16>
    %8 = vector.shape_cast %7 : vector<1x1x8x16xbf16> to vector<8x16xbf16>
    %cst = arith.constant dense<0.000000e+00> : vector<16x8xf32>
    %9 = tpu.matmul %4, %6, %cst {dimension_numbers = #tpu.dot_dimension_numbers<[1], [1], [0], [0], [0, 0, 1, 0], [], []>} : vector<16x16xbf16>, vector<8x16xbf16>, vector<16x8xf32> -> vector<16x8xf32>
    %cst_12 = arith.constant 2.500000e-01 : f32
    %10 = vector.broadcast %cst_12 : f32 to vector<16x8xf32>
    %11 = arith.mulf %9, %10 : vector<16x8xf32>
    %12 = tpu.iota {dimensions = array<i32: 0>} : vector<16x8xi32>
    %13 = tpu.iota {dimensions = array<i32: 1>} : vector<16x8xi32>
    %c8_i32 = arith.constant 8 : i32
    %14 = arith.muli %arg2, %c8_i32 : i32
    %15 = vector.broadcast %14 : i32 to vector<16x8xi32>
    %16 = arith.addi %13, %15 : vector<16x8xi32>
    %c8_i32_13 = arith.constant 8 : i32
    %17 = vector.broadcast %c8_i32_13 : i32 to vector<16x8xi32>
    %18 = arith.cmpi sge, %12, %17 : vector<16x8xi32>
    %c8_i32_14 = arith.constant 8 : i32
    %c0_i32_15 = arith.constant 0 : i32
    %19 = vector.broadcast %c8_i32_14 : i32 to vector<16x8xi32>
    %20 = vector.broadcast %c0_i32_15 : i32 to vector<16x8xi32>
    %21 = arith.select %18, %19, %20 : vector<16x8xi1>, vector<16x8xi32>
    %22 = arith.subi %12, %21 : vector<16x8xi32>
    %23 = arith.cmpi sle, %16, %22 : vector<16x8xi32>
    %cst_16 = arith.constant -1.000000e+30 : f32
    %24 = vector.broadcast %cst_16 : f32 to vector<16x8xf32>
    %25 = arith.select %23, %11, %24 : vector<16x8xi1>, vector<16x8xf32>
    %c0_17 = arith.constant 0 : index
    %c0_18 = arith.constant 0 : index
    %26 = vector.load %arg7[%c0_17, %c0_18] : memref<16x1xf32, #tpu.memory_space<vmem>>, vector<16x1xf32>
    %cst_19 = arith.constant dense<0xFF800000> : vector<16xf32>
    %27 = vector.multi_reduction <maximumf>, %25, %cst_19 [1] : vector<16x8xf32> to vector<16xf32>
    %28 = vector.shape_cast %27 : vector<16xf32> to vector<16x1xf32>
    %29 = arith.maximumf %26, %28 : vector<16x1xf32>
    %30 = arith.subf %26, %29 : vector<16x1xf32>
    %31 = math.exp %30 : vector<16x1xf32>
    %32 = vector.broadcast %29 : vector<16x1xf32> to vector<16x8xf32>
    %33 = arith.subf %25, %32 : vector<16x8xf32>
    %34 = math.exp %33 : vector<16x8xf32>
    %c0_20 = arith.constant 0 : index
    %c0_21 = arith.constant 0 : index
    %35 = vector.load %arg8[%c0_20, %c0_21] : memref<16x1xf32, #tpu.memory_space<vmem>>, vector<16x1xf32>
    %36 = arith.mulf %31, %35 : vector<16x1xf32>
    %cst_22 = arith.constant dense<0.000000e+00> : vector<16xf32>
    %37 = vector.multi_reduction <add>, %34, %cst_22 [1] : vector<16x8xf32> to vector<16xf32>
    %38 = vector.shape_cast %37 : vector<16xf32> to vector<16x1xf32>
    %39 = arith.addf %36, %38 : vector<16x1xf32>
    %c0_23 = arith.constant 0 : index
    %c0_24 = arith.constant 0 : index
    %40 = vector.load %arg8[%c0_23, %c0_24] : memref<16x1xf32, #tpu.memory_space<vmem>>, vector<16x1xf32>
    tpu.vector_store %arg8[%c0_23, %c0_24], %39 {strides = array<i32>} : memref<16x1xf32, #tpu.memory_space<vmem>>, vector<16x1xf32>,
    %c0_25 = arith.constant 0 : index
    %c0_26 = arith.constant 0 : index
    %41 = vector.load %arg9[%c0_25, %c0_26] : memref<16x16xf32, #tpu.memory_space<vmem>>, vector<16x16xf32>
    %42 = vector.broadcast %31 : vector<16x1xf32> to vector<16x16xf32>
    %43 = arith.mulf %42, %41 : vector<16x16xf32>
    %44 = arith.truncf %34 : vector<16x8xf32> to vector<16x8xbf16>
    %cst_27 = arith.constant dense<0.000000e+00> : vector<16x16xf32>
    %45 = tpu.matmul %44, %8, %cst_27 {dimension_numbers = #tpu.dot_dimension_numbers<[1], [0], [0], [1], [0, 0, 1, 1], [], []>} : vector<16x8xbf16>, vector<8x16xbf16>, vector<16x16xf32> -> vector<16x16xf32>
    %46 = arith.addf %43, %45 : vector<16x16xf32>
    %c0_28 = arith.constant 0 : index
    %c0_29 = arith.constant 0 : index
    %47 = vector.load %arg9[%c0_28, %c0_29] : memref<16x16xf32, #tpu.memory_space<vmem>>, vector<16x16xf32>
    tpu.vector_store %arg9[%c0_28, %c0_29], %46 {strides = array<i32>} : memref<16x16xf32, #tpu.memory_space<vmem>>, vector<16x16xf32>,
    %c0_30 = arith.constant 0 : index
    %c0_31 = arith.constant 0 : index
    %48 = vector.load %arg7[%c0_30, %c0_31] : memref<16x1xf32, #tpu.memory_space<vmem>>, vector<16x1xf32>
    tpu.vector_store %arg7[%c0_30, %c0_31], %29 {strides = array<i32>} : memref<16x1xf32, #tpu.memory_space<vmem>>, vector<16x1xf32>,
    %c0_i32_32 = arith.constant 0 : i32
    %49 = arith.cmpi eq, %arg2, %c0_i32_32 : i32
    %50 = arith.extui %49 : i1 to i32
    %c0_i32_33 = arith.constant 0 : i32
    %51 = arith.cmpi ne, %50, %c0_i32_33 : i32
    scf.if %51 {
      %c0_34 = arith.constant 0 : index
      %c0_35 = arith.constant 0 : index
      %52 = vector.load %arg9[%c0_34, %c0_35] : memref<16x16xf32, #tpu.memory_space<vmem>>, vector<16x16xf32>
      %c0_36 = arith.constant 0 : index
      %c0_37 = arith.constant 0 : index
      %53 = vector.load %arg8[%c0_36, %c0_37] : memref<16x1xf32, #tpu.memory_space<vmem>>, vector<16x1xf32>
      %54 = tpu.reciprocal %53 {approx = true} : vector<16x1xf32> -> vector<16x1xf32>
      %55 = vector.broadcast %54 : vector<16x1xf32> to vector<16x16xf32>
      %56 = arith.mulf %52, %55 : vector<16x16xf32>
      %c0_38 = arith.constant 0 : index
      %c0_39 = arith.constant 0 : index
      %c0_40 = arith.constant 0 : index
      %c0_41 = arith.constant 0 : index
      %57 = vector.load %arg6[%c0_38, %c0_39, %c0_40, %c0_41] : memref<1x1x16x16xf32, #tpu.memory_space<vmem>>, vector<1x1x16x16xf32>
      %58 = vector.shape_cast %57 : vector<1x1x16x16xf32> to vector<16x16xf32>
      %59 = vector.shape_cast %56 : vector<16x16xf32> to vector<1x1x16x16xf32>
      tpu.vector_store %arg6[%c0_38, %c0_39, %c0_40, %c0_41], %59 {strides = array<i32>} : memref<1x1x16x16xf32, #tpu.memory_space<vmem>>, vector<1x1x16x16xf32>,
    } else {
    }
    return
  }
  func.func @transform_0(%arg0: i32, %arg1: i32, %arg2: i32) -> (i32, i32, i32, i32) {
    %c0_i32 = arith.constant 0 : i32
    %c0_i32_0 = arith.constant 0 : i32
    %c0_i32_1 = arith.constant 0 : i32
    return %arg0, %arg1, %c0_i32, %c0_i32_0 : i32, i32, i32, i32
  }
  func.func @transform_1(%arg0: i32, %arg1: i32, %arg2: i32) -> (i32, i32, i32, i32) {
    %c0_i32 = arith.constant 0 : i32
    %c0_i32_0 = arith.constant 0 : i32
    return %arg0, %arg1, %arg2, %c0_i32 : i32, i32, i32, i32
  }
  func.func @transform_2(%arg0: i32, %arg1: i32, %arg2: i32) -> (i32, i32, i32, i32) {
    %c0_i32 = arith.constant 0 : i32
    %c0_i32_0 = arith.constant 0 : i32
    return %arg0, %arg1, %arg2, %c0_i32 : i32, i32, i32, i32
  }
  func.func @transform_3(%arg0: i32, %arg1: i32, %arg2: i32) -> (i32, i32, i32, i32) {
    %c0_i32 = arith.constant 0 : i32
    %c0_i32_0 = arith.constant 0 : i32
    %c0_i32_1 = arith.constant 0 : i32
    return %arg0, %arg1, %c0_i32, %c0_i32_0 : i32, i32, i32, i32
  }
}

module attributes {stable_mosaic.version = 11 : i64} {
  func.func @_matmul_kernel(%arg0: i32, %arg1: i32, %arg2: i32, %arg3: memref<16x64xf32, #tpu.memory_space<vmem>>, %arg4: memref<64x64xbf16, #tpu.memory_space<vmem>>, %arg5: memref<16x64xf32, #tpu.memory_space<vmem>>, %arg6: memref<16x64xf32, #tpu.memory_space<vmem>>) attributes {dimension_semantics = [#tpu.dimension_semantics<parallel>, #tpu.dimension_semantics<parallel>, #tpu.dimension_semantics<arbitrary>], iteration_bounds = array<i64: 1, 1, 1>, scalar_prefetch = 0 : i64, scratch_operands = 1 : i64, tpu.core_type = #tpu.core_type<tc>, window_params = [{transform_indices = @transform_0, window_bounds = array<i64: 16, 64>}, {transform_indices = @transform_1, window_bounds = array<i64: 64, 64>}, {transform_indices = @transform_2, window_bounds = array<i64: 16, 64>}]} {
    %c0_i32 = arith.constant 0 : i32
    %0 = arith.cmpi eq, %arg2, %c0_i32 : i32
    %1 = arith.extui %0 : i1 to i32
    %c0_i32_0 = arith.constant 0 : i32
    %2 = arith.cmpi ne, %1, %c0_i32_0 : i32
    scf.if %2 {
      %cst_10 = arith.constant 0.000000e+00 : f32
      %13 = vector.broadcast %cst_10 : f32 to vector<16x64xf32>
      %c0_11 = arith.constant 0 : index
      %c0_12 = arith.constant 0 : index
      %14 = vector.load %arg6[%c0_11, %c0_12] : memref<16x64xf32, #tpu.memory_space<vmem>>, vector<16x64xf32>
      tpu.vector_store %arg6[%c0_11, %c0_12], %13 {strides = array<i32>} : memref<16x64xf32, #tpu.memory_space<vmem>>, vector<16x64xf32>,
    } else {
    }
    %c0 = arith.constant 0 : index
    %c0_1 = arith.constant 0 : index
    %3 = vector.load %arg6[%c0, %c0_1] : memref<16x64xf32, #tpu.memory_space<vmem>>, vector<16x64xf32>
    %c0_2 = arith.constant 0 : index
    %c0_3 = arith.constant 0 : index
    %4 = vector.load %arg3[%c0_2, %c0_3] : memref<16x64xf32, #tpu.memory_space<vmem>>, vector<16x64xf32>
    %5 = arith.truncf %4 : vector<16x64xf32> to vector<16x64xbf16>
    %c0_4 = arith.constant 0 : index
    %c0_5 = arith.constant 0 : index
    %6 = vector.load %arg4[%c0_4, %c0_5] : memref<64x64xbf16, #tpu.memory_space<vmem>>, vector<64x64xbf16>
    %cst = arith.constant dense<0.000000e+00> : vector<16x64xf32>
    %7 = tpu.matmul %5, %6, %cst {dimension_numbers = #tpu.dot_dimension_numbers<[1], [0], [0], [1], [0, 0, 1, 1], [], []>} : vector<16x64xbf16>, vector<64x64xbf16>, vector<16x64xf32> -> vector<16x64xf32>
    %8 = arith.addf %3, %7 : vector<16x64xf32>
    %c0_6 = arith.constant 0 : index
    %c0_7 = arith.constant 0 : index
    %9 = vector.load %arg6[%c0_6, %c0_7] : memref<16x64xf32, #tpu.memory_space<vmem>>, vector<16x64xf32>
    tpu.vector_store %arg6[%c0_6, %c0_7], %8 {strides = array<i32>} : memref<16x64xf32, #tpu.memory_space<vmem>>, vector<16x64xf32>,
    %c0_i32_8 = arith.constant 0 : i32
    %10 = arith.cmpi eq, %arg2, %c0_i32_8 : i32
    %11 = arith.extui %10 : i1 to i32
    %c0_i32_9 = arith.constant 0 : i32
    %12 = arith.cmpi ne, %11, %c0_i32_9 : i32
    scf.if %12 {
      %c0_10 = arith.constant 0 : index
      %c0_11 = arith.constant 0 : index
      %13 = vector.load %arg6[%c0_10, %c0_11] : memref<16x64xf32, #tpu.memory_space<vmem>>, vector<16x64xf32>
      %c0_12 = arith.constant 0 : index
      %c0_13 = arith.constant 0 : index
      %14 = vector.load %arg5[%c0_12, %c0_13] : memref<16x64xf32, #tpu.memory_space<vmem>>, vector<16x64xf32>
      tpu.vector_store %arg5[%c0_12, %c0_13], %13 {strides = array<i32>} : memref<16x64xf32, #tpu.memory_space<vmem>>, vector<16x64xf32>,
    } else {
    }
    return
  }
  func.func @transform_0(%arg0: i32, %arg1: i32, %arg2: i32) -> (i32, i32) {
    %c0_i32 = arith.constant 0 : i32
    return %arg0, %arg2 : i32, i32
  }
  func.func @transform_1(%arg0: i32, %arg1: i32, %arg2: i32) -> (i32, i32) {
    %c0_i32 = arith.constant 0 : i32
    return %arg2, %arg1 : i32, i32
  }
  func.func @transform_2(%arg0: i32, %arg1: i32, %arg2: i32) -> (i32, i32) {
    %c0_i32 = arith.constant 0 : i32
    return %arg0, %arg1 : i32, i32
  }
}

module attributes {stable_mosaic.version = 11 : i64} {
  func.func @_ffn_kernel(%arg0: i32, %arg1: i32, %arg2: memref<16x64xf32, #tpu.memory_space<vmem>>, %arg3: memref<1x64xf32, #tpu.memory_space<vmem>>, %arg4: memref<64x128xbf16, #tpu.memory_space<vmem>>, %arg5: memref<64x128xbf16, #tpu.memory_space<vmem>>, %arg6: memref<128x64xbf16, #tpu.memory_space<vmem>>, %arg7: memref<16x64xf32, #tpu.memory_space<vmem>>, %arg8: memref<16x64xbf16, #tpu.memory_space<vmem>>, %arg9: memref<16x64xf32, #tpu.memory_space<vmem>>) attributes {dimension_semantics = [#tpu.dimension_semantics<parallel>, #tpu.dimension_semantics<arbitrary>], iteration_bounds = array<i64: 1, 1>, scalar_prefetch = 0 : i64, scratch_operands = 2 : i64, tpu.core_type = #tpu.core_type<tc>, window_params = [{transform_indices = @transform_0, window_bounds = array<i64: 16, 64>}, {pipeline_mode = #tpu.pipeline_mode<synchronous>, transform_indices = @transform_1, window_bounds = array<i64: 1, 64>}, {transform_indices = @transform_2, window_bounds = array<i64: 64, 128>}, {transform_indices = @transform_3, window_bounds = array<i64: 64, 128>}, {transform_indices = @transform_4, window_bounds = array<i64: 128, 64>}, {transform_indices = @transform_5, window_bounds = array<i64: 16, 64>}]} {
    %c0_i32 = arith.constant 0 : i32
    %0 = arith.cmpi eq, %arg1, %c0_i32 : i32
    %1 = arith.extui %0 : i1 to i32
    %c0_i32_0 = arith.constant 0 : i32
    %2 = arith.cmpi ne, %1, %c0_i32_0 : i32
    scf.if %2 {
      %c0_17 = arith.constant 0 : index
      %c0_18 = arith.constant 0 : index
      %24 = vector.load %arg2[%c0_17, %c0_18] : memref<16x64xf32, #tpu.memory_space<vmem>>, vector<16x64xf32>
      %25 = arith.mulf %24, %24 : vector<16x64xf32>
      %cst_19 = arith.constant dense<0.000000e+00> : vector<16xf32>
      %26 = vector.multi_reduction <add>, %25, %cst_19 [1] : vector<16x64xf32> to vector<16xf32>
      %27 = vector.shape_cast %26 : vector<16xf32> to vector<16x1xf32>
      %cst_20 = arith.constant 6.400000e+01 : f32
      %28 = vector.broadcast %cst_20 : f32 to vector<16x1xf32>
      %29 = arith.divf %27, %28 : vector<16x1xf32>
      %cst_21 = arith.constant 9.99999974E-6 : f32
      %30 = vector.broadcast %cst_21 : f32 to vector<16x1xf32>
      %31 = arith.addf %29, %30 : vector<16x1xf32>
      %32 = math.rsqrt %31 : vector<16x1xf32>
      %33 = vector.broadcast %32 : vector<16x1xf32> to vector<16x64xf32>
      %34 = arith.mulf %24, %33 : vector<16x64xf32>
      %c0_22 = arith.constant 0 : index
      %c0_23 = arith.constant 0 : index
      %35 = vector.load %arg3[%c0_22, %c0_23] : memref<1x64xf32, #tpu.memory_space<vmem>>, vector<1x64xf32>
      %36 = vector.broadcast %35 : vector<1x64xf32> to vector<16x64xf32>
      %37 = arith.mulf %34, %36 : vector<16x64xf32>
      %38 = arith.truncf %37 : vector<16x64xf32> to vector<16x64xbf16>
      %c0_24 = arith.constant 0 : index
      %c0_25 = arith.constant 0 : index
      %39 = vector.load %arg8[%c0_24, %c0_25] : memref<16x64xbf16, #tpu.memory_space<vmem>>, vector<16x64xbf16>
      tpu.vector_store %arg8[%c0_24, %c0_25], %38 {strides = array<i32>} : memref<16x64xbf16, #tpu.memory_space<vmem>>, vector<16x64xbf16>,
      %cst_26 = arith.constant 0.000000e+00 : f32
      %40 = vector.broadcast %cst_26 : f32 to vector<16x64xf32>
      %c0_27 = arith.constant 0 : index
      %c0_28 = arith.constant 0 : index
      %41 = vector.load %arg9[%c0_27, %c0_28] : memref<16x64xf32, #tpu.memory_space<vmem>>, vector<16x64xf32>
      tpu.vector_store %arg9[%c0_27, %c0_28], %40 {strides = array<i32>} : memref<16x64xf32, #tpu.memory_space<vmem>>, vector<16x64xf32>,
    } else {
    }
    %c0 = arith.constant 0 : index
    %c0_1 = arith.constant 0 : index
    %3 = vector.load %arg8[%c0, %c0_1] : memref<16x64xbf16, #tpu.memory_space<vmem>>, vector<16x64xbf16>
    %c0_2 = arith.constant 0 : index
    %c0_3 = arith.constant 0 : index
    %4 = vector.load %arg4[%c0_2, %c0_3] : memref<64x128xbf16, #tpu.memory_space<vmem>>, vector<64x128xbf16>
    %cst = arith.constant dense<0.000000e+00> : vector<16x128xf32>
    %5 = tpu.matmul %3, %4, %cst {dimension_numbers = #tpu.dot_dimension_numbers<[1], [0], [0], [1], [0, 0, 1, 1], [], []>} : vector<16x64xbf16>, vector<64x128xbf16>, vector<16x128xf32> -> vector<16x128xf32>
    %c0_4 = arith.constant 0 : index
    %c0_5 = arith.constant 0 : index
    %6 = vector.load %arg5[%c0_4, %c0_5] : memref<64x128xbf16, #tpu.memory_space<vmem>>, vector<64x128xbf16>
    %cst_6 = arith.constant dense<0.000000e+00> : vector<16x128xf32>
    %7 = tpu.matmul %3, %6, %cst_6 {dimension_numbers = #tpu.dot_dimension_numbers<[1], [0], [0], [1], [0, 0, 1, 1], [], []>} : vector<16x64xbf16>, vector<64x128xbf16>, vector<16x128xf32> -> vector<16x128xf32>
    %8 = arith.negf %5 : vector<16x128xf32>
    %9 = math.exp %8 : vector<16x128xf32>
    %cst_7 = arith.constant 1.000000e+00 : f32
    %10 = vector.broadcast %cst_7 : f32 to vector<16x128xf32>
    %11 = arith.addf %10, %9 : vector<16x128xf32>
    %12 = arith.divf %10, %11 : vector<16x128xf32>
    %13 = arith.mulf %5, %12 : vector<16x128xf32>
    %14 = arith.mulf %13, %7 : vector<16x128xf32>
    %c0_8 = arith.constant 0 : index
    %c0_9 = arith.constant 0 : index
    %15 = vector.load %arg9[%c0_8, %c0_9] : memref<16x64xf32, #tpu.memory_space<vmem>>, vector<16x64xf32>
    %16 = arith.truncf %14 : vector<16x128xf32> to vector<16x128xbf16>
    %c0_10 = arith.constant 0 : index
    %c0_11 = arith.constant 0 : index
    %17 = vector.load %arg6[%c0_10, %c0_11] : memref<128x64xbf16, #tpu.memory_space<vmem>>, vector<128x64xbf16>
    %cst_12 = arith.constant dense<0.000000e+00> : vector<16x64xf32>
    %18 = tpu.matmul %16, %17, %cst_12 {dimension_numbers = #tpu.dot_dimension_numbers<[1], [0], [0], [1], [0, 0, 1, 1], [], []>} : vector<16x128xbf16>, vector<128x64xbf16>, vector<16x64xf32> -> vector<16x64xf32>
    %19 = arith.addf %15, %18 : vector<16x64xf32>
    %c0_13 = arith.constant 0 : index
    %c0_14 = arith.constant 0 : index
    %20 = vector.load %arg9[%c0_13, %c0_14] : memref<16x64xf32, #tpu.memory_space<vmem>>, vector<16x64xf32>
    tpu.vector_store %arg9[%c0_13, %c0_14], %19 {strides = array<i32>} : memref<16x64xf32, #tpu.memory_space<vmem>>, vector<16x64xf32>,
    %c0_i32_15 = arith.constant 0 : i32
    %21 = arith.cmpi eq, %arg1, %c0_i32_15 : i32
    %22 = arith.extui %21 : i1 to i32
    %c0_i32_16 = arith.constant 0 : i32
    %23 = arith.cmpi ne, %22, %c0_i32_16 : i32
    scf.if %23 {
      %c0_17 = arith.constant 0 : index
      %c0_18 = arith.constant 0 : index
      %24 = vector.load %arg9[%c0_17, %c0_18] : memref<16x64xf32, #tpu.memory_space<vmem>>, vector<16x64xf32>
      %c0_19 = arith.constant 0 : index
      %c0_20 = arith.constant 0 : index
      %25 = vector.load %arg7[%c0_19, %c0_20] : memref<16x64xf32, #tpu.memory_space<vmem>>, vector<16x64xf32>
      tpu.vector_store %arg7[%c0_19, %c0_20], %24 {strides = array<i32>} : memref<16x64xf32, #tpu.memory_space<vmem>>, vector<16x64xf32>,
    } else {
    }
    return
  }
  func.func @transform_0(%arg0: i32, %arg1: i32) -> (i32, i32) {
    %c0_i32 = arith.constant 0 : i32
    %c0_i32_0 = arith.constant 0 : i32
    return %arg0, %c0_i32 : i32, i32
  }
  func.func @transform_1(%arg0: i32, %arg1: i32) -> (i32, i32) {
    %c0_i32 = arith.constant 0 : i32
    %c0_i32_0 = arith.constant 0 : i32
    %c0_i32_1 = arith.constant 0 : i32
    return %c0_i32, %c0_i32_0 : i32, i32
  }
  func.func @transform_2(%arg0: i32, %arg1: i32) -> (i32, i32) {
    %c0_i32 = arith.constant 0 : i32
    %c0_i32_0 = arith.constant 0 : i32
    return %c0_i32, %arg1 : i32, i32
  }
  func.func @transform_3(%arg0: i32, %arg1: i32) -> (i32, i32) {
    %c0_i32 = arith.constant 0 : i32
    %c0_i32_0 = arith.constant 0 : i32
    return %c0_i32, %arg1 : i32, i32
  }
  func.func @transform_4(%arg0: i32, %arg1: i32) -> (i32, i32) {
    %c0_i32 = arith.constant 0 : i32
    %c0_i32_0 = arith.constant 0 : i32
    return %arg1, %c0_i32 : i32, i32
  }
  func.func @transform_5(%arg0: i32, %arg1: i32) -> (i32, i32) {
    %c0_i32 = arith.constant 0 : i32
    %c0_i32_0 = arith.constant 0 : i32
    return %arg0, %c0_i32 : i32, i32
  }
}

module attributes {stable_mosaic.version = 11 : i64} {
  func.func @_rmsnorm_kernel(%arg0: i32, %arg1: memref<16x64xf32, #tpu.memory_space<vmem>>, %arg2: memref<1x64xf32, #tpu.memory_space<vmem>>, %arg3: memref<16x64xf32, #tpu.memory_space<vmem>>) attributes {dimension_semantics = [#tpu.dimension_semantics<parallel>], iteration_bounds = array<i64: 1>, scalar_prefetch = 0 : i64, scratch_operands = 0 : i64, tpu.core_type = #tpu.core_type<tc>, window_params = [{transform_indices = @transform_0, window_bounds = array<i64: 16, 64>}, {pipeline_mode = #tpu.pipeline_mode<synchronous>, transform_indices = @transform_1, window_bounds = array<i64: 1, 64>}, {transform_indices = @transform_2, window_bounds = array<i64: 16, 64>}]} {
    %c0 = arith.constant 0 : index
    %c0_0 = arith.constant 0 : index
    %0 = vector.load %arg1[%c0, %c0_0] : memref<16x64xf32, #tpu.memory_space<vmem>>, vector<16x64xf32>
    %1 = arith.mulf %0, %0 : vector<16x64xf32>
    %cst = arith.constant dense<0.000000e+00> : vector<16xf32>
    %2 = vector.multi_reduction <add>, %1, %cst [1] : vector<16x64xf32> to vector<16xf32>
    %3 = vector.shape_cast %2 : vector<16xf32> to vector<16x1xf32>
    %cst_1 = arith.constant 6.400000e+01 : f32
    %4 = vector.broadcast %cst_1 : f32 to vector<16x1xf32>
    %5 = arith.divf %3, %4 : vector<16x1xf32>
    %cst_2 = arith.constant 9.99999974E-6 : f32
    %6 = vector.broadcast %cst_2 : f32 to vector<16x1xf32>
    %7 = arith.addf %5, %6 : vector<16x1xf32>
    %8 = math.rsqrt %7 : vector<16x1xf32>
    %9 = vector.broadcast %8 : vector<16x1xf32> to vector<16x64xf32>
    %10 = arith.mulf %0, %9 : vector<16x64xf32>
    %c0_3 = arith.constant 0 : index
    %c0_4 = arith.constant 0 : index
    %11 = vector.load %arg2[%c0_3, %c0_4] : memref<1x64xf32, #tpu.memory_space<vmem>>, vector<1x64xf32>
    %12 = vector.broadcast %11 : vector<1x64xf32> to vector<16x64xf32>
    %13 = arith.mulf %10, %12 : vector<16x64xf32>
    %c0_5 = arith.constant 0 : index
    %c0_6 = arith.constant 0 : index
    %14 = vector.load %arg3[%c0_5, %c0_6] : memref<16x64xf32, #tpu.memory_space<vmem>>, vector<16x64xf32>
    tpu.vector_store %arg3[%c0_5, %c0_6], %13 {strides = array<i32>} : memref<16x64xf32, #tpu.memory_space<vmem>>, vector<16x64xf32>,
    return
  }
  func.func @transform_0(%arg0: i32) -> (i32, i32) {
    %c0_i32 = arith.constant 0 : i32
    %c0_i32_0 = arith.constant 0 : i32
    return %arg0, %c0_i32 : i32, i32
  }
  func.func @transform_1(%arg0: i32) -> (i32, i32) {
    %c0_i32 = arith.constant 0 : i32
    %c0_i32_0 = arith.constant 0 : i32
    %c0_i32_1 = arith.constant 0 : i32
    return %c0_i32, %c0_i32_0 : i32, i32
  }
  func.func @transform_2(%arg0: i32) -> (i32, i32) {
    %c0_i32 = arith.constant 0 : i32
    %c0_i32_0 = arith.constant 0 : i32
    return %arg0, %c0_i32 : i32, i32
  }
}

</mosaic_0001>

<bundles_post_ra>
// kernel: _lambda_.9
= control target key start
LH: loop header
LB: loop body
LE: loop exit
PB: predicated region body
PF: predicated region fallthrough
CT: control target
= control target key end

     0   :  { %vm19_vm0 = vcmask 523264   ;;  %v160_v6 = vmov 0.0   ;;  %vm161_vm1 = vmmov 0   ;;  %s212_s0 = inlined_call_operand.vmem [shape: f32[16,64], index: 0, kind: input, shape index: {}]   ;;  %s213_s2 = inlined_call_operand.vmem [shape: bf16[64,128], index: 2, kind: input, shape index: {}]   ;;  %s214_s1 = inlined_call_operand.vmem [shape: f32[1,64], index: 1, kind: input, shape index: {}]   ;;  %s215_s3 = inlined_call_operand.vmem [shape: f32[16,128], index: 3, kind: output, shape index: {}]  }
   0x1   :  { %v15_v0 = vld [vmem:[%s212_s0] sm:$0xff]  ;;  %v16_v1 = vld [vmem:[%s212_s0 + $0x8] sm:$0xff]  ;;  %138 = vmatprep.subr.bf16.mxu0 %v160_v6  ;;  %v152_v7 = vld [vmem:[%s213_s2 + $0x18] sm:$0xff]   ;;  %146 = vmatprep.mubr.msk.bf16.mxu0 %vm161_vm1, %v160_v6 }
   0x2   :  { %v17_v2 = vmul.f32 %v15_v0, %v15_v0  ;;  %v18_v3 = vmul.f32 %v16_v1, %v16_v1  ;;  %139 = vmatpush3.bf16.msra.mxu0 %v152_v7  ;;  %v153_v8 = vld [vmem:[%s213_s2 + $0x10] sm:$0xff]   ;;  %v154_v9 = vld [vmem:[%s213_s2 + $0x8] sm:$0xff]   ;;  %v155_v10 = vld [vmem:[%s213_s2] sm:$0xff]  }
   0x3   :  { %140 = vmatprep.subr.bf16.mxu0 %v160_v6  ;;  %v127_v20 = vld [vmem:[%s214_s1] ss:$0 sm:$0xff] }
   0x4   :  { %v20_v4 = vsel %vm19_vm0, %v17_v2, 0.0  ;;  %v23_v5 = vsel %vm19_vm0, %v18_v3, 0.0 }
   0x5   :  { %21 = vadd.xlane.f32.xlu0 %v20_v4 }
   0x6   :  { %141 = vmatpush3.bf16.msra.mxu0 %v153_v8 }
   0x7   :  { %142 = vmatprep.subr.bf16.mxu0 %v160_v6 }
   0x9   :  { %24 = vadd.xlane.f32.xlu0 %v23_v5 }
   0xa   :  { %143 = vmatpush3.bf16.msra.mxu0 %v154_v9 }
   0xb   :  { %144 = vmatprep.subr.bf16.mxu0 %v160_v6 }
   0xe   :  { %145 = vmatpush3.bf16.msra.mxu0 %v155_v10 }
  0x8e   :  { %v22_v11 = vpop.xlane.xlu0 %21 }
  0x8f   :  { %v27_v12 = vmul.f32 0.015625, %v22_v11 }
  0x91   :  { %v29_v13 = vadd.f32 1e-05, %v27_v12 }
  0x92   :  { %v25_v14 = vpop.xlane.xlu0 %24 }
  0x93   :  { %156 = vrsqrt.f32 %v29_v13  ;;  %v28_v15 = vmul.f32 0.015625, %v25_v14 }
  0x95   :  { %v30_v16 = vadd.f32 1e-05, %v28_v15 }
  0x97   :  { %158 = vrsqrt.f32 %v30_v16 }
  0xa0   :  { %v157_v17 = vpop.eup %156 }
  0xa1   :  { %v33_v18 = vmul.f32 %v157_v17, %v15_v0 }
  0xa3   :  { %v42_v22 = vmul.f32 %v127_v20, %v33_v18 }
  0xa4   :  { %v159_v19 = vpop.eup %158 }
  0xa5   :  { %v34_v21 = vmul.f32 %v159_v19, %v16_v1 }
  0xa7   :  { %v43_v23 = vmul.f32 %v127_v20, %v34_v21 }
  0xa9   :  { %v44_v24 = vpack.c.bf16 %v43_v23, %v42_v22 }
  0xab   :  { %147 = vmatmul.mubr.msk.bf16.vlgmr.msra.gmra.mxu0 %vm19_vm0, %v44_v24 }
 0x16b   :  { %v114_v25 = vpop.f32.mrf.mxu0 }
 0x16c   :  { %121 = vst [vmem:[%s215_s3] sm:$0xff] %v114_v25 }
 0x16d   :  { %v148_v26 = vpop.f32.mrf.mxu0 }
 0x16f   :  { %v117_v27 = vpop.f32.mrf.mxu0 }
 0x170   :  { %122 = vst [vmem:[%s215_s3 + $0x8] sm:$0xff] %v117_v27 }
 0x171   :  { %v149_v28 = vpop.f32.mrf.mxu0 }

// kernel: _lambda_.11
= control target key start
LH: loop header
LB: loop body
LE: loop exit
PB: predicated region body
PF: predicated region fallthrough
CT: control target
= control target key end

     0   :  { %vm16_vm0 = vcmask 523264   ;;  %v144_v0 = vmov 0.0   ;;  %vm145_vm1 = vmmov 0   ;;  %s192_s1 = inlined_call_operand.vmem [shape: bf16[64,64], index: 1, kind: input, shape index: {}]   ;;  %s193_s0 = inlined_call_operand.vmem [shape: f32[16,64], index: 0, kind: input, shape index: {}]   ;;  %s194_s2 = inlined_call_operand.vmem [shape: f32[16,64], index: 2, kind: output, shape index: {}]  }
   0x1   :  { %126 = vmatprep.subr.bf16.mxu0 %v144_v0  ;;  %v140_v1 = vld [vmem:[%s192_s1 + $0x18] sm:$0xff]   ;;  %134 = vmatprep.mubr.msk.bf16.mxu0 %vm145_vm1, %v144_v0  ;;  %17 = vst.msk [vmem:[#allocation2] sm:$0xff] %vm16_vm0, %v144_v0  ;;  %18 = vst.msk [vmem:[#allocation2 + $0x8] sm:$0xff] %vm16_vm0, %v144_v0  ;;  %v141_v2 = vld [vmem:[%s192_s1 + $0x10] sm:$0xff]  }
   0x2   :  { %127 = vmatpush3.bf16.msra.mxu0 %v140_v1  ;;  %v142_v3 = vld [vmem:[%s192_s1 + $0x8] sm:$0xff]   ;;  %v143_v4 = vld [vmem:[%s192_s1] sm:$0xff]  }
   0x3   :  { %128 = vmatprep.subr.bf16.mxu0 %v144_v0  ;;  %v21_v5 = vld [vmem:[%s193_s0] sm:$0xff]  ;;  %v22_v6 = vld [vmem:[%s193_s0 + $0x8] sm:$0xff] }
   0x4   :  { %v23_v7 = vpack.c.bf16 %v22_v6, %v21_v5 }
   0x6   :  { %129 = vmatpush3.bf16.msra.mxu0 %v141_v2 }
   0x7   :  { %130 = vmatprep.subr.bf16.mxu0 %v144_v0 }
   0x8   :  { %v19_v8 = vld [vmem:[#allocation2] sm:$0xff]  ;;  %v20_v12 = vld [vmem:[#allocation2 + $0x8] sm:$0xff] }
   0xa   :  { %131 = vmatpush3.bf16.msra.mxu0 %v142_v3 }
   0xb   :  { %132 = vmatprep.subr.bf16.mxu0 %v144_v0 }
   0xe   :  { %133 = vmatpush3.bf16.msra.mxu0 %v143_v4 }
  0x11   :  { %135 = vmatmul.mubr.msk.bf16.vlgmr.msra.gmra.mxu0 %vm16_vm0, %v23_v7 }
  0xd1   :  { %v94_v9 = vpop.f32.mrf.mxu0 }
  0xd2   :  { %v101_v10 = vadd.f32 %v94_v9, %v19_v8 }
  0xd3   :  { %v136_v11 = vpop.f32.mrf.mxu0 }
  0xd4   :  { %103 = vst.msk [vmem:[#allocation2] sm:$0xff] %vm16_vm0, %v101_v10 }
  0xd5   :  { %v97_v13 = vpop.f32.mrf.mxu0 }
  0xd6   :  { %v102_v14 = vadd.f32 %v97_v13, %v20_v12 }
  0xd7   :  { %v137_v15 = vpop.f32.mrf.mxu0 }
  0xd8   :  { %104 = vst.msk [vmem:[#allocation2 + $0x8] sm:$0xff] %vm16_vm0, %v102_v14 }
  0xdb   :  { %v108_v16 = vld [vmem:[#allocation2] sm:$0xff] }
  0xdc   :  { %110 = vst.msk [vmem:[%s194_s2] sm:$0xff] %vm16_vm0, %v108_v16 }
  0xdf   :  { %v109_v17 = vld [vmem:[#allocation2 + $0x8] sm:$0xff] }
  0xe0   :  { %111 = vst.msk [vmem:[%s194_s2 + $0x8] sm:$0xff] %vm16_vm0, %v109_v17 }

// kernel: _lambda_.10
= control target key start
LH: loop header
LB: loop body
LE: loop exit
PB: predicated region body
PF: predicated region fallthrough
CT: control target
= control target key end

     0   :  { %s828_s12 = smov 0   ;;  %s830_s13 = smov 0   ;;  %s917_s0 = inlined_call_operand.vmem [shape: bf16[2,2,16,16], index: 0, kind: input, shape index: {}]   ;;  %s918_s1 = inlined_call_operand.vmem [shape: bf16[2,2,8,16], index: 1, kind: input, shape index: {}]   ;;  %s919_s2 = inlined_call_operand.vmem [shape: bf16[2,2,8,16], index: 2, kind: input, shape index: {}]   ;;  %s920_s3 = inlined_call_operand.vmem [shape: f32[2,2,16,16], index: 3, kind: output, shape index: {}]  }
   0x1   :  { %s832_s14 = smov 0   ;;  %s834_s15 = smov 0  }
   0x2   :  { %s836_s16 = smov 0  }
   0x3 LB: > { %s28_s17 = sadd.s32 1, %s794_s14  ;;  %s32_s18 = sadd.s32 1, %s798_s15  ;;  %s802_s16 = sphi %s836_s16, %s13_s16   ;;  %s798_s15 = sphi %s834_s15, %s924_s15   ;;  %s794_s14 = sphi %s832_s14, %s923_s14   ;;  %s790_s13 = sphi %s830_s13, %s922_s13   ;;  %s786_s12 = sphi %s828_s12, %s921_s12  }
   0x4   : > { %p30_p0 = scmp.ge.s32.totalorder %s28_s17, 2  ;;  %p672_p1 = scmp.ge.s32.totalorder %s802_s16, 1 }
   0x5   : > { %p204_p2 = scmp.lt.s32.totalorder %s802_s16, 5 }
   0x6   : > { %s926_s17 = smov (%p30_p0, %s28_s17), 0  ;;  %s928_s18 = smov (!%p30_p0, %s32_s18), %s798_s15 }
   0x7   : > { %p205_p3 = pnand %p672_p1, %p204_p2  ;;  %p34_p4 = scmp.ge.s32.totalorder %s928_s18, 2 }
   0x8   : > { %p258_p5 = scmp.lt.s32.totalorder (!%p205_p3), %s790_s13, 1  ;;  %p260_p6 = scmp.lt.s32.totalorder (!%p205_p3), %s786_s12, 1 }
   0x9   : > { %s930_s18 = smov (%p34_p4, %s928_s18), 0  ;;  %208 = sbr.rel (%p205_p3) target bundleno = 801 (0x321), region = 32 }
   0xe   : > { %vm308_vm0 = vcmask 130048   ;;  %v804_v0 = vmov 0.0   ;;  %vm805_vm1 = vmmov 0   ;;  %s932_s13 = smov (!%p258_p5, %s790_s13), 1  ;;  %s934_s12 = smov (!%p260_p6, %s786_s12), 1  ;;  %vm303_vm2 = vcmask 7168  }
   0xf   : > { %693 = vmatprep.subr.bf16.mxu0 %v804_v0  ;;  %309 = vst.msk [vmem:[#allocation4] sm:$0xff] %vm308_vm0, %v804_v0  ;;  %310 = vst.msk [vmem:[#allocation4 + $0x8] sm:$0xff] %vm308_vm0, %v804_v0  ;;  %695 = vmatprep.mubr.msk.bf16.mxu0 %vm805_vm1, %v804_v0  ;;  %s674_s19 = sshll.u32 %s932_s13, 2  ;;  %s676_s20 = sshll.u32 %s932_s13, 1  ;;  %v806_v4 = vmov -1e+30   ;;  %v370_v5 = vlaneseq }
  0x10   : > { %699 = vmatprep.subr.bf16.mxu1 %v804_v0  ;;  %701 = vmatprep.mubr.msk.bf16.mxu1 %vm805_vm1, %v804_v0  ;;  %s673_s21 = sshll.u32 %s934_s12, 1  ;;  %s860_s22 = sadd.s32 %s676_s20, %s934_s12  ;;  %304 = vst.msk [vmem:[#allocation2] sm:$0xff] %vm303_vm2, %v806_v4  ;;  %305 = vst.msk [vmem:[#allocation2 + $0x8] sm:$0xff] %vm303_vm2, %v806_v4  ;;  %vm390_vm4 = vcmask 64512   ;;  %v807_v20 = vmov 0   ;;  %vm454_vm6 = vcmask 1043456  }
  0x11   : > { %s862_s23 = sadd.s32 %s674_s19, %s673_s21  ;;  %s677_s24 = sshll.u32 %s860_s22, 2  ;;  %306 = vst.msk [vmem:[#allocation3] sm:$0xff] %vm303_vm2, %v804_v0  ;;  %307 = vst.msk [vmem:[#allocation3 + $0x8] sm:$0xff] %vm303_vm2, %v804_v0  ;;  %v371_v6 = vshrl.u32 %v370_v5, 7  ;;  %v374_v7 = vand.u32 127, %v370_v5  ;;  %749 = vset.pattern.permute.xlu1 %v807_v20  ;;  %750 = vset.pattern.permute.xlu0 %v807_v20 }
  0x12   : > { %s675_s25 = sshll.u32 %s862_s23, 2  ;;  %s277_s28 = scalar_lea.vmem %s918_s1, %s677_s24 }
  0x13   : > { %s266_s4 = scalar_lea.vmem %s917_s0, %s675_s25  ;;  %v313_v1 = vld [vmem:[%s277_s28] sm:$0xf]  ;;  %v372_v8 = vadd.s32 8, %v371_v6  ;;  %vm384_vm3 = vcmp.le.s32.totalorder %v374_v7, %v371_v6  ;;  %s288_s7 = scalar_lea.vmem %s919_s2, %s677_s24 }
  0x14   : > { %v325_v2 = vsel %vm308_vm0, %v313_v1, 0  ;;  %v751_v3 = vld [vmem:[%s266_s4] sm:$0xff]   ;;  %s682_s8 = sshll.u32 %s862_s23, 3 }
  0x15   : > { %694 = vmatpush3.bf16.xpose.msra.mxu0 %v325_v2  ;;  %v685_v10 = vadd.s32 4294967288, %v372_v8  ;;  %v314_v29 = vld [vmem:[%s288_s7] sm:$0xf]  ;;  %s297_s11 = scalar_lea.vmem %s920_s3, %s682_s8 }
  0x16   : > { %v456_v30 = vsel %vm454_vm6, %v314_v29, 0  ;;  %v436_v58 = vld [vmem:[#allocation4] sm:$0xff]  ;;  %v437_v61 = vld [vmem:[#allocation4 + $0x8] sm:$0xff] }
  0x17   : > { %vm385_vm5 = vcmp.le.s32.totalorder %v374_v7, %v685_v10  ;;  %v388_v21 = vld [vmem:[#allocation2] sm:$0xff]  ;;  %v389_v24 = vld [vmem:[#allocation2 + $0x8] sm:$0xff]  ;;  %700 = vmatpush3.bf16.msra.mxu1 %v456_v30 }
  0x18   : > { %v421_v46 = vld [vmem:[#allocation3] sm:$0xff]  ;;  %v422_v49 = vld [vmem:[#allocation3 + $0x8] sm:$0xff] }
  0x1c   : > { %696 = vmatmul.mubr.msk.bf16.vlgmr.msra.gmra.mxu0 %vm308_vm0, %v751_v3 }
  0xdc   : > { %v361_v9 = vpop.f32.mrf.mxu0 }
  0xdd   : > { %v368_v11 = vmul.f32 0.25, %v361_v9 }
  0xde   : > { %v697_v12 = vpop.f32.mrf.mxu0 }
  0xdf   : > { %v386_v13 = vsel %vm384_vm3, %v368_v11, -1e+30 }
  0xe0   : > { %v364_v14 = vpop.f32.mrf.mxu0  ;;  %v391_v15 = vsel %vm390_vm4, %v386_v13, -inf }
  0xe1   : > { %v369_v16 = vmul.f32 0.25, %v364_v14  ;;  %392 = vmax.xlane.f32.xlu0 %v391_v15 }
  0xe2   : > { %v698_v17 = vpop.f32.mrf.mxu0 }
  0xe3   : > { %v387_v18 = vsel %vm385_vm5, %v369_v16, -1e+30 }
  0xe4   : > { %v394_v19 = vsel %vm390_vm4, %v387_v18, -inf }
  0xe5   : > { %395 = vmax.xlane.f32.xlu0 %v394_v19 }
 0x16a   : > { %v393_v22 = vpop.xlane.xlu0 %392 }
 0x16b   : > { %v397_v23 = vmax.f32 %v388_v21, %v393_v22 }
 0x16d   : > { %v399_v25 = vsub.f32 %v388_v21, %v397_v23  ;;  %503 = vst.msk [vmem:[#allocation2] sm:$0xff] %vm303_vm2, %v397_v23  ;;  %407 = vperm.xlu1 %749, %v397_v23  }
 0x16e   : > { %v396_v26 = vpop.xlane.xlu0 %395 }
 0x16f   : > { %v398_v27 = vmax.f32 %v389_v24, %v396_v26  ;;  %v401_v43 = vmul.f32 1.442695, %v399_v25 }
 0x171   : > { %v400_v28 = vsub.f32 %v389_v24, %v398_v27  ;;  %504 = vst.msk [vmem:[#allocation2 + $0x8] sm:$0xff] %vm303_vm2, %v398_v27  ;;  %412 = vperm.xlu1 %749, %v398_v27  }
 0x173   : > { %v403_v40 = vmul.f32 1.442695, %v400_v28 }
 0x1e8   : > { %v408_v31 = vpop.permute.xlu1 %407 }
 0x1e9   : > { %v415_v32 = vsub.f32 %v386_v13, %v408_v31 }
 0x1eb   : > { %v417_v33 = vmul.f32 1.442695, %v415_v32 }
 0x1ec   : > { %v413_v34 = vpop.permute.xlu1 %412 }
 0x1ed   : > { %752 = vpow2.f32 %v417_v33  ;;  %v416_v35 = vsub.f32 %v387_v18, %v413_v34 }
 0x1ef   : > { %v419_v36 = vmul.f32 1.442695, %v416_v35 }
 0x1f1   : > { %754 = vpow2.f32 %v419_v36 }
 0x1f2   : > { %756 = vpow2.f32 %v403_v40 }
 0x1f3   : > { %758 = vpow2.f32 %v401_v43 }
 0x1fa   : > { %v753_v37 = vpop.eup %752 }
 0x1fb   : > { %v425_v38 = vsel %vm390_vm4, %v753_v37, 0.0 }
 0x1fc   : > { %426 = vadd.xlane.f32.xlu0 %v425_v38 }
 0x1fe   : > { %v755_v39 = vpop.eup %754 }
 0x1ff   : > { %v428_v41 = vsel %vm390_vm4, %v755_v39, 0.0  ;;  %v450_v42 = vpack.c.bf16 %v755_v39, %v753_v37  ;;  %v757_v44 = vpop.eup %756 }
 0x200   : > { %429 = vadd.xlane.f32.xlu1 %v428_v41  ;;  %v759_v45 = vpop.eup %758  ;;  %v424_v51 = vmul.f32 %v757_v44, %v422_v49 }
 0x201   : > { %702 = vmatmul.mubr.msk.bf16.vlgmr.msra.gmra.mxu1 %vm390_vm4, %v450_v42  ;;  %v423_v47 = vmul.f32 %v759_v45, %v421_v46 }
 0x211   : > { %445 = vperm.xlu1 %749, %v757_v44  }
 0x212   : > { %440 = vperm.xlu0 %750, %v759_v45  }
 0x285   : > { %v427_v48 = vpop.xlane.xlu0 %426 }
 0x286   : > { %v431_v50 = vadd.f32 %v427_v48, %v423_v47 }
 0x288   : > { %434 = vst.msk [vmem:[#allocation3] sm:$0xff] %vm303_vm2, %v431_v50 }
 0x289   : > { %v430_v52 = vpop.xlane.xlu1 %429 }
 0x28a   : > { %v432_v53 = vadd.f32 %v430_v52, %v424_v51 }
 0x28c   : > { %435 = vst.msk [vmem:[#allocation3 + $0x8] sm:$0xff] %vm303_vm2, %v432_v53 }
 0x28d   : > { %v441_v59 = vpop.permute.xlu0 %440  ;;  %v446_v62 = vpop.permute.xlu1 %445 }
 0x28e   : > { %v448_v60 = vmul.f32 %v441_v59, %v436_v58  ;;  %v449_v2 = vmul.f32 %v446_v62, %v437_v61 }
 0x28f   : > { %v510_v54 = vld [vmem:[#allocation3] sm:$0xff] }
 0x290   : > { %760 = vrcp.f32 %v510_v54 }
 0x293   : > { %v511_v55 = vld [vmem:[#allocation3 + $0x8] sm:$0xff] }
 0x294   : > { %762 = vrcp.f32 %v511_v55 }
 0x29d   : > { %v761_v56 = vpop.eup %760 }
 0x29e   : > { %516 = vperm.xlu0 %750, %v761_v56  }
 0x2a1   : > { %v763_v57 = vpop.eup %762 }
 0x2a2   : > { %521 = vperm.xlu0 %750, %v763_v57  }
 0x2c1   : > { %v492_v63 = vpop.f32.mrf.mxu1 }
 0x2c2   : > { %v499_v0 = vadd.f32 %v492_v63, %v448_v60 }
 0x2c3   : > { %v703_v1 = vpop.f32.mrf.mxu1 }
 0x2c4   : > { %501 = vst.msk [vmem:[#allocation4] sm:$0xff] %vm308_vm0, %v499_v0 }
 0x2c5   : > { %v495_v3 = vpop.f32.mrf.mxu1 }
 0x2c6   : > { %v500_v4 = vadd.f32 %v495_v3, %v449_v2 }
 0x2c7   : > { %v704_v5 = vpop.f32.mrf.mxu1 }
 0x2c8   : > { %502 = vst.msk [vmem:[#allocation4 + $0x8] sm:$0xff] %vm308_vm0, %v500_v4 }
 0x2cb   : > { %v508_v6 = vld [vmem:[#allocation4] sm:$0xff] }
 0x2cf   : > { %v509_v9 = vld [vmem:[#allocation4 + $0x8] sm:$0xff] }
 0x319   : > { %v517_v7 = vpop.permute.xlu0 %516 }
 0x31a   : > { %v524_v8 = vmul.f32 %v517_v7, %v508_v6 }
 0x31c   : > { %526 = vst.msk [vmem:[%s297_s11] sm:$0xff] %vm308_vm0, %v524_v8 }
 0x31d   : > { %v522_v10 = vpop.permute.xlu0 %521 }
 0x31e   : > { %v525_v11 = vmul.f32 %v522_v10, %v509_v9 }
 0x320   : > { %527 = vst.msk [vmem:[%s297_s11 + $0x8] sm:$0xff] %vm308_vm0, %v525_v11 }
 0x321 PF: > { %s13_s16 = sadd.s32 1, %s802_s16   ;;  %s921_s12 = smov %s794_s14 }
 0x322   : > { %p10_p7 = scmp.ge.s32.totalorder %s13_s16, 6   ;;  %s922_s13 = smov %s798_s15 }
 0x323   : > { %s923_s14 = smov %s926_s17  ;;  %s924_s15 = smov %s930_s18 }
 0x324   :  { %12 = sbr.rel (!%p10_p7) target bundleno = 3 (0x3), region = 76 }

// kernel: _lambda_.17
= control target key start
LH: loop header
LB: loop body
LE: loop exit
PB: predicated region body
PF: predicated region fallthrough
CT: control target
= control target key end

     0   :  { %vm16_vm0 = vcmask 523264   ;;  %s123_s0 = inlined_call_operand.vmem [shape: f32[16,64], index: 0, kind: input, shape index: {}]   ;;  %s124_s1 = inlined_call_operand.vmem [shape: f32[1,64], index: 1, kind: input, shape index: {}]   ;;  %s125_s2 = inlined_call_operand.hbm [shape: f32[16,64], index: 2, kind: output, shape index: {}]  }
   0x1   :  { %v12_v0 = vld [vmem:[%s123_s0] sm:$0xff]  ;;  %v13_v1 = vld [vmem:[%s123_s0 + $0x8] sm:$0xff] }
   0x2   :  { %7 = vsyncpa [#allocation3], 0  ;;  %v14_v2 = vmul.f32 %v12_v0, %v12_v0  ;;  %v15_v3 = vmul.f32 %v13_v1, %v13_v1  ;;  %v59_v13 = vld [vmem:[%s124_s1] ss:$0 sm:$0xff]  ;;  %s89_s14 = smov [#allocation2]  }
   0x3   :  { %s48_s15 = sshll.u32 %s89_s14, 4  ;;  %s49_s15 = int_to_ptr.vmem [resolvable:$true] %s48_s15 }
   0x4   :  { %v17_v4 = vsel %vm16_vm0, %v14_v2, 0.0  ;;  %v20_v5 = vsel %vm16_vm0, %v15_v3, 0.0  ;;  %s67_s16 = scalar_lea.vmem %s49_s15, 256  ;;  %p72_p1 = scmp.lt.s32.totalorder %s49_s15, %s49_s15 }
   0x5   :  { %18 = vadd.xlane.f32.xlu0 %v17_v4  ;;  %p68_p0 = scmp.ne.s32.totalorder %s49_s15, %s67_s16  ;;  %p73_p2 = scmp.lt.s32.totalorder %s67_s16, %s67_s16 }
   0x7   :  { %p74_p3 = por %p73_p2, %p72_p1 }
   0x9   :  { %21 = vadd.xlane.f32.xlu0 %v20_v5  ;;  %p75_p4 = pnand %p74_p3, %p68_p0 }
  0x8e   :  { %v19_v6 = vpop.xlane.xlu0 %18 }
  0x8f   :  { %v24_v7 = vmul.f32 0.015625, %v19_v6 }
  0x91   :  { %v26_v8 = vadd.f32 1e-05, %v24_v7 }
  0x92   :  { %v22_v9 = vpop.xlane.xlu0 %21 }
  0x93   :  { %63 = vrsqrt.f32 %v26_v8  ;;  %v25_v10 = vmul.f32 0.015625, %v22_v9 }
  0x95   :  { %v27_v11 = vadd.f32 1e-05, %v25_v10 }
  0x97   :  { %65 = vrsqrt.f32 %v27_v11 }
  0xa0   :  { %v64_v12 = vpop.eup %63 }
  0xa1   :  { %v30_v14 = vmul.f32 %v64_v12, %v12_v0 }
  0xa3   :  { %v39_v15 = vmul.f32 %v59_v13, %v30_v14 }
  0xa4   :  { %v66_v16 = vpop.eup %65 }
  0xa5   :  { %v31_v17 = vmul.f32 %v66_v16, %v13_v1  ;;  %41 = vst.msk [vmem:[#allocation2] sm:$0xff] %vm16_vm0, %v39_v15 }
  0xa7   :  { %v40_v18 = vmul.f32 %v59_v13, %v31_v17 }
  0xa9   :  { %42 = vst.msk [vmem:[#allocation2 + $0x8] sm:$0xff] %vm16_vm0, %v40_v18 }
  0xaa   :  { %78 = shalt.err (!%p75_p4)
}
  0xab   :  { %s90_s1 = smov 128   ;;  %s91_s17 = smov 8  }
  0xac   :  { %54 = dma.vmem_to_hbm [thread:$0]  %s49_s15, 256, %s125_s2, [#allocation3], %s90_s1, %s90_s1, %s91_s17  }
  0xad   :  { %87 = dma.done.wait [#allocation3], 256  }
  0xae   :  { %88 = vsyncadd [#allocation3], 4294967040 }
  0xaf   :  { %58 = vsyncpa [#allocation3], 1 }

// kernel: _lambda_.12
= control target key start
LH: loop header
LB: loop body
LE: loop exit
PB: predicated region body
PF: predicated region fallthrough
CT: control target
= control target key end

     0   :  { %vm29_vm0 = vcmask 523264   ;;  %v483_v7 = vmov 0.0   ;;  %vm484_vm1 = vmmov 0   ;;  %vm62_vm2 = vcmask 519168   ;;  %s612_s0 = inlined_call_operand.vmem [shape: f32[16,64], index: 0, kind: input, shape index: {}]   ;;  %s613_s2 = inlined_call_operand.vmem [shape: bf16[64,128], index: 2, kind: input, shape index: {}]   ;;  %s614_s3 = inlined_call_operand.vmem [shape: bf16[64,128], index: 3, kind: input, shape index: {}]   ;;  %s615_s1 = inlined_call_operand.vmem [shape: f32[1,64], index: 1, kind: input, shape index: {}]   ;;  %s616_s4 = inlined_call_operand.vmem [shape: bf16[128,64], index: 4, kind: input, shape index: {}]   ;;  %s617_s5 = inlined_call_operand.vmem [shape: f32[16,64], index: 5, kind: output, shape index: {}]  }
   0x1   :  { %v25_v0 = vld [vmem:[%s612_s0] sm:$0xff]  ;;  %v26_v1 = vld [vmem:[%s612_s0 + $0x8] sm:$0xff]  ;;  %v454_v6 = vld [vmem:[%s613_s2 + $0x18] sm:$0xff]   ;;  %408 = vmatprep.subr.bf16.mxu1 %v483_v7  ;;  %65 = vst.msk [vmem:[#allocation3] sm:$0xff] %vm29_vm0, %v483_v7  ;;  %432 = vmatprep.subr.bf16.mxu0 %v483_v7 }
   0x2   :  { %v27_v2 = vmul.f32 %v25_v0, %v25_v0  ;;  %v28_v3 = vmul.f32 %v26_v1, %v26_v1  ;;  %66 = vst.msk [vmem:[#allocation3 + $0x8] sm:$0xff] %vm29_vm0, %v483_v7  ;;  %409 = vmatpush3.bf16.msra.mxu1 %v454_v6  ;;  %v455_v8 = vld [vmem:[%s613_s2 + $0x10] sm:$0xff]   ;;  %v456_v9 = vld [vmem:[%s613_s2 + $0x8] sm:$0xff]   ;;  %v457_v10 = vld [vmem:[%s613_s2] sm:$0xff]   ;;  %416 = vmatprep.mubr.msk.bf16.mxu1 %vm484_vm1, %v483_v7 }
   0x3   :  { %410 = vmatprep.subr.bf16.mxu1 %v483_v7  ;;  %448 = vmatprep.mubr.msk.bf16.mxu0 %vm484_vm1, %v483_v7  ;;  %v363_v18 = vld [vmem:[%s615_s1] ss:$0 sm:$0xff]  ;;  %v459_v26 = vld [vmem:[%s614_s3 + $0x18] sm:$0xff]   ;;  %v460_v28 = vld [vmem:[%s614_s3 + $0x10] sm:$0xff]  }
   0x4   :  { %v30_v4 = vsel %vm29_vm0, %v27_v2, 0.0  ;;  %v33_v5 = vsel %vm29_vm0, %v28_v3, 0.0  ;;  %v461_v29 = vld [vmem:[%s614_s3 + $0x8] sm:$0xff]   ;;  %v462_v30 = vld [vmem:[%s614_s3] sm:$0xff]   ;;  %v463_v31 = vld [vmem:[%s616_s4 + $0x38] sm:$0xff]  }
   0x5   :  { %31 = vadd.xlane.f32.xlu0 %v30_v4  ;;  %433 = vmatpush3.bf16.msra.mxu0 %v463_v31  ;;  %v464_v32 = vld [vmem:[%s616_s4 + $0x30] sm:$0xff]   ;;  %v465_v33 = vld [vmem:[%s616_s4 + $0x28] sm:$0xff]   ;;  %v466_v34 = vld [vmem:[%s616_s4 + $0x20] sm:$0xff]  }
   0x6   :  { %411 = vmatpush3.bf16.msra.mxu1 %v455_v8  ;;  %434 = vmatprep.subr.bf16.mxu0 %v483_v7  ;;  %v467_v35 = vld [vmem:[%s616_s4 + $0x18] sm:$0xff]   ;;  %v468_v36 = vld [vmem:[%s616_s4 + $0x10] sm:$0xff]   ;;  %v469_v37 = vld [vmem:[%s616_s4 + $0x8] sm:$0xff]  }
   0x7   :  { %412 = vmatprep.subr.bf16.mxu1 %v483_v7  ;;  %v470_v38 = vld [vmem:[%s616_s4] sm:$0xff]  }
   0x8   :  { %v240_v60 = vld [vmem:[#allocation3] sm:$0xff] }
   0x9   :  { %34 = vadd.xlane.f32.xlu0 %v33_v5  ;;  %435 = vmatpush3.bf16.msra.mxu0 %v464_v32 }
   0xa   :  { %413 = vmatpush3.bf16.msra.mxu1 %v456_v9  ;;  %436 = vmatprep.subr.bf16.mxu0 %v483_v7 }
   0xb   :  { %414 = vmatprep.subr.bf16.mxu1 %v483_v7 }
   0xd   :  { %437 = vmatpush3.bf16.msra.mxu0 %v465_v33 }
   0xe   :  { %415 = vmatpush3.bf16.msra.mxu1 %v457_v10  ;;  %438 = vmatprep.subr.bf16.mxu0 %v483_v7 }
   0xf   :  { %420 = vmatprep.subr.bf16.mxu1 %v483_v7 }
  0x11   :  { %439 = vmatpush3.bf16.msra.mxu0 %v466_v34 }
  0x12   :  { %440 = vmatprep.subr.bf16.mxu0 %v483_v7 }
  0x15   :  { %441 = vmatpush3.bf16.msra.mxu0 %v467_v35 }
  0x16   :  { %442 = vmatprep.subr.bf16.mxu0 %v483_v7 }
  0x19   :  { %443 = vmatpush3.bf16.msra.mxu0 %v468_v36 }
  0x1a   :  { %444 = vmatprep.subr.bf16.mxu0 %v483_v7 }
  0x1d   :  { %445 = vmatpush3.bf16.msra.mxu0 %v469_v37 }
  0x1e   :  { %446 = vmatprep.subr.bf16.mxu0 %v483_v7 }
  0x21   :  { %447 = vmatpush3.bf16.msra.mxu0 %v470_v38 }
  0x8e   :  { %v32_v11 = vpop.xlane.xlu0 %31 }
  0x8f   :  { %v37_v12 = vmul.f32 0.015625, %v32_v11 }
  0x91   :  { %v39_v13 = vadd.f32 1e-05, %v37_v12 }
  0x92   :  { %v35_v14 = vpop.xlane.xlu0 %34 }
  0x93   :  { %471 = vrsqrt.f32 %v39_v13  ;;  %v38_v15 = vmul.f32 0.015625, %v35_v14 }
  0x95   :  { %v40_v16 = vadd.f32 1e-05, %v38_v15 }
  0x97   :  { %473 = vrsqrt.f32 %v40_v16 }
  0xa0   :  { %v472_v17 = vpop.eup %471 }
  0xa1   :  { %v43_v19 = vmul.f32 %v472_v17, %v25_v0  ;;  %v241_v0 = vld [vmem:[#allocation3 + $0x8] sm:$0xff] }
  0xa3   :  { %v52_v20 = vmul.f32 %v363_v18, %v43_v19 }
  0xa4   :  { %v474_v21 = vpop.eup %473 }
  0xa5   :  { %v387_v22 = vpack.c.bf16 %v52_v20, %v52_v20  ;;  %v44_v23 = vmul.f32 %v474_v21, %v26_v1 }
  0xa7   :  { %63 = vst.msk [vmem:[#allocation2] sm:$0xf] %vm62_vm2, %v387_v22  ;;  %v53_v24 = vmul.f32 %v363_v18, %v44_v23 }
  0xa9   :  { %v388_v25 = vpack.c.bf16 %v53_v24, %v53_v24 }
  0xab   :  { %64 = vst.msk [vmem:[#allocation2 + $0x4] sm:$0xf] %vm62_vm2, %v388_v25 }
  0xb2   :  { %v458_v27 = vld [vmem:[#allocation2] sm:$0xff]  }
  0xb3   :  { %417 = vmatmul.mubr.msk.bf16.vlgmr.msra.gmra.mxu1 %vm29_vm0, %v458_v27 }
  0xb4   :  { %421 = vmatpush3.bf16.msra.mxu1 %v459_v26  ;;  %428 = vmatprep.mubr.msk.bf16.mxu1 %vm484_vm1, %v483_v7 }
  0xb5   :  { %422 = vmatprep.subr.bf16.mxu1 %v483_v7 }
  0xb8   :  { %423 = vmatpush3.bf16.msra.mxu1 %v460_v28 }
  0xb9   :  { %424 = vmatprep.subr.bf16.mxu1 %v483_v7 }
  0xbc   :  { %425 = vmatpush3.bf16.msra.mxu1 %v461_v29 }
  0xbd   :  { %426 = vmatprep.subr.bf16.mxu1 %v483_v7 }
  0xc0   :  { %427 = vmatpush3.bf16.msra.mxu1 %v462_v30 }
  0xc3   :  { %429 = vmatmul.mubr.msk.bf16.vlgmr.msra.gmra.mxu1 %vm29_vm0, %v458_v27 }
 0x173   :  { %v144_v39 = vpop.f32.mrf.mxu1 }
 0x174   :  { %v377_v40 = vmul.f32 -1.442695, %v144_v39 }
 0x175   :  { %v418_v41 = vpop.f32.mrf.mxu1 }
 0x176   :  { %475 = vpow2.f32 %v377_v40 }
 0x177   :  { %v147_v42 = vpop.f32.mrf.mxu1 }
 0x178   :  { %v378_v43 = vmul.f32 -1.442695, %v147_v42 }
 0x179   :  { %v419_v44 = vpop.f32.mrf.mxu1 }
 0x17a   :  { %477 = vpow2.f32 %v378_v43 }
 0x183   :  { %v476_v45 = vpop.eup %475  ;;  %v217_v46 = vpop.f32.mrf.mxu1 }
 0x184   :  { %v230_v47 = vadd.f32 1.0, %v476_v45 }
 0x185   :  { %v430_v48 = vpop.f32.mrf.mxu1 }
 0x186   :  { %479 = vrcp.f32 %v230_v47 }
 0x187   :  { %v478_v49 = vpop.eup %477  ;;  %v220_v50 = vpop.f32.mrf.mxu1 }
 0x188   :  { %v231_v51 = vadd.f32 1.0, %v478_v49 }
 0x189   :  { %v431_v52 = vpop.f32.mrf.mxu1 }
 0x18a   :  { %481 = vrcp.f32 %v231_v51 }
 0x193   :  { %v480_v53 = vpop.eup %479 }
 0x194   :  { %v236_v54 = vmul.f32 %v480_v53, %v144_v39 }
 0x196   :  { %v238_v57 = vmul.f32 %v236_v54, %v217_v46 }
 0x197   :  { %v482_v55 = vpop.eup %481 }
 0x198   :  { %v237_v56 = vmul.f32 %v482_v55, %v147_v42 }
 0x19a   :  { %v239_v58 = vmul.f32 %v237_v56, %v220_v50 }
 0x19c   :  { %v242_v59 = vpack.c.bf16 %v239_v58, %v238_v57 }
 0x19e   :  { %449 = vmatmul.mubr.bf16.vlgmr.msra.gmra.mxu0 %v242_v59 }
 0x25e   :  { %v341_v61 = vpop.f32.mrf.mxu0 }
 0x25f   :  { %v348_v62 = vadd.f32 %v341_v61, %v240_v60 }
 0x260   :  { %v450_v63 = vpop.f32.mrf.mxu0 }
 0x261   :  { %350 = vst.msk [vmem:[#allocation3] sm:$0xff] %vm29_vm0, %v348_v62 }
 0x262   :  { %v344_v1 = vpop.f32.mrf.mxu0 }
 0x263   :  { %v349_v2 = vadd.f32 %v344_v1, %v241_v0 }
 0x264   :  { %v451_v3 = vpop.f32.mrf.mxu0 }
 0x265   :  { %351 = vst.msk [vmem:[#allocation3 + $0x8] sm:$0xff] %vm29_vm0, %v349_v2 }
 0x268   :  { %v355_v4 = vld [vmem:[#allocation3] sm:$0xff] }
 0x269   :  { %357 = vst.msk [vmem:[%s617_s5] sm:$0xff] %vm29_vm0, %v355_v4 }
 0x26c   :  { %v356_v5 = vld [vmem:[#allocation3 + $0x8] sm:$0xff] }
 0x26d   :  { %358 = vst.msk [vmem:[%s617_s5 + $0x8] sm:$0xff] %vm29_vm0, %v356_v5 }

</bundles_post_ra>
